<compile_context>
chip_gen: v5e
topology: v5e:2x2
jax: 0.10.0
libtpu: 0.0.40
codegen_flags: <defaults>
</compile_context>

<pallas_src>
import numpy as np

import jax
import jax.numpy as jnp
from jax.experimental import pallas as pl
from jax.experimental.pallas import tpu as pltpu


def _interp_taps(out_size: int, in_size: int):
    """2-tap source indices/weights matching F.interpolate(mode='bilinear',
    align_corners=False) along one axis (half-pixel centers, edge clamp)."""
    o = np.arange(out_size, dtype=np.float64)
    scale = in_size / out_size
    src = np.maximum((o + 0.5) * scale - 0.5, 0.0)   # PyTorch clamps negative src
    i0 = np.minimum(np.floor(src).astype(np.int64), in_size - 1)
    i1 = np.minimum(i0 + 1, in_size - 1)
    w1 = (src - i0).astype(np.float32)
    w0 = (1.0 - w1).astype(np.float32)
    return i0, i1, w0, w1


def _interp_matrix(out_size: int, in_size: int) -> np.ndarray:
    """Dense row-interpolation matrix built from the same taps."""
    i0, i1, w0, w1 = _interp_taps(out_size, in_size)
    m = np.zeros((out_size, in_size), np.float32)
    rows = np.arange(out_size)
    m[rows, i0] += w0
    m[rows, i1] += w1
    return m


def _make_kernel(w_i0, w_i1, w_w0, w_w1, C: int):
    """Build the kernel with the W-axis taps baked in as static constants."""
    w_i0 = [int(v) for v in w_i0]
    w_i1 = [int(v) for v in w_i1]
    w_w0 = [float(v) for v in w_w0]
    w_w1 = [float(v) for v in w_w1]
    w_out = len(w_i0)

    def kernel(rh_ref, x_ref, o_ref):
        # rh_ref: (H_t, H_in)        tiny row-interp tile
        # x_ref : (1, H_in, W_in*C)  lane-dense input slab (resident across H tiles)
        # o_ref : (1, H_t, W_out*C)  lane-dense fused output slab
        x2 = x_ref[0]                                             # (H_in, W_in*C)

        # H pass first: one lane-dense MXU matmul, no reshape / relayout.
        y1 = jnp.dot(rh_ref[...], x2,
                     preferred_element_type=jnp.float32)          # (H_t, W_in*C)

        # W pass: static 2-tap blend on the VPU, stores go straight into the
        # fused output slab (lane-aligned when C % 128 == 0).
        for w in range(w_out):
            a = y1[:, w_i0[w] * C:(w_i0[w] + 1) * C]
            if w_w1[w] == 0.0:
                blended = a
            else:
                b = y1[:, w_i1[w] * C:(w_i1[w] + 1) * C]
                blended = w_w0[w] * a + w_w1[w] * b
            o_ref[0, :, w * C:(w + 1) * C] = blended.astype(o_ref.dtype)

    return kernel


def _choose_h_tile(h_out: int, row_bytes: int, fixed_bytes: int,
                   budget_bytes: int, want_steps: int) -> int:
    """Largest H_out tile (multiple of 8, divisor of H_out, or H_out itself)
    that fits the per-step VMEM budget and still yields >= want_steps tiles."""
    cands = sorted({h_out} | {d for d in range(8, h_out + 1, 8) if h_out % d == 0},
                   reverse=True)
    fitting = [d for d in cands if fixed_bytes + d * row_bytes <= budget_bytes]
    if not fitting:
        # TODO(synk): fall back to W_out tiling (contiguous column ranges of the
        # fused slab) when even the smallest legal H tile exceeds the budget.
        return cands[-1]
    for d in fitting:                 # descending: largest tile with enough steps
        if h_out // d >= want_steps:
            return d
    return fitting[-1]                # step target unreachable; take the most steps


def resize_layer(x: jnp.ndarray, size) -> jnp.ndarray:
    """x: (B, H, W, C) -> (B, H_out, W_out, C); bilinear, align_corners=False."""
    H_out, W_out = int(size[0]), int(size[1])
    B, H_in, W_in, C = x.shape
    itemsize = int(jnp.dtype(x.dtype).itemsize)

    # Interpolation operands: Rh drives the MXU H pass, taps drive the VPU W pass.
    rh_dtype = x.dtype if x.dtype == jnp.bfloat16 else jnp.float32
    rh = jnp.asarray(_interp_matrix(H_out, H_in), dtype=rh_dtype)
    w_i0, w_i1, w_w0, w_w1 = _interp_taps(W_out, W_in)

    # Generation-aware VMEM sizing (v5e/v6e: 128 MiB, v7x: 64 MiB per TC).
    try:
        vmem_cap = int(pltpu.get_tpu_info().vmem_capacity_bytes)
    except Exception:
        vmem_cap = 64 * 1024 * 1024
    vmem_limit = max(32 * 1024 * 1024, min(int(vmem_cap * 0.6), 96 * 1024 * 1024))
    budget = vmem_limit // 2

    # Per-step VMEM accounting: x2 for double-buffered pipeline blocks,
    # plus the f32 intermediate y1.
    fixed_bytes = 2 * H_in * W_in * C * itemsize + 2 * H_out * H_in * 4
    row_bytes = 2 * W_out * C * itemsize + W_in * C * 4
    want_h_steps = max(1, -(-8 // B))          # aim for >= ~8 total grid steps
    H_t = _choose_h_tile(H_out, row_bytes, fixed_bytes, budget, want_h_steps)
    n_h = H_out // H_t

    x2d = x.reshape(B, H_in, W_in * C)          # free contiguous view, C on lanes
    out_shape = jax.ShapeDtypeStruct((B, H_out, W_out * C), x.dtype)

    flops = 2 * B * H_out * H_in * W_in * C + 3 * B * H_out * W_out * C
    bytes_accessed = (B * H_in * W_in * C + B * H_out * W_out * C) * itemsize

    out = pl.pallas_call(
        _make_kernel(w_i0, w_i1, w_w0, w_w1, C),
        out_shape=out_shape,
        grid=(B, n_h),
        in_specs=[
            pl.BlockSpec((H_t, H_in), lambda b, h: (h, 0)),             # Rh tile
            pl.BlockSpec((1, H_in, W_in * C), lambda b, h: (b, 0, 0)),  # input, resident over h
        ],
        out_specs=pl.BlockSpec((1, H_t, W_out * C), lambda b, h: (b, h, 0)),
        compiler_params=pltpu.CompilerParams(
            dimension_semantics=("parallel", "parallel"),
            vmem_limit_bytes=vmem_limit,
        ),
        cost_estimate=pl.CostEstimate(
            flops=flops, transcendentals=0, bytes_accessed=bytes_accessed),
    )(rh, x2d)

    return out.reshape(B, H_out, W_out, C)      # free contiguous view


if __name__ == "__main__":
    key = jax.random.PRNGKey(0)
    B, H, W, C = 2, 16, 16, 128
    size = (32, 32)

    x = jax.random.normal(key, (B, H, W, C), dtype=jnp.float32)

    y = jax.block_until_ready(resize_layer(x, size))

    # Host-side (numpy) reference of the identical separable bilinear resize.
    rh = _interp_matrix(size[0], H)
    rw = _interp_matrix(size[1], W)
    ref = np.einsum('oh,bhwc,pw->bopc', rh, np.asarray(x), rw, optimize=True)

    assert y.shape == (B, size[0], size[1], C)
    assert jnp.allclose(y, jnp.asarray(ref), atol=1e-3, rtol=1e-3), "mismatch vs reference"

    print("KERNEL_OK")
</pallas_src>

<mosaic_0001>
module attributes {stable_mosaic.version = 11 : i64} {
  func.func @kernel(%arg0: i32, %arg1: i32, %arg2: memref<8x16xf32, #tpu.memory_space<vmem>>, %arg3: memref<1x16x2048xf32, #tpu.memory_space<vmem>>, %arg4: memref<1x8x4096xf32, #tpu.memory_space<vmem>>) attributes {dimension_semantics = [#tpu.dimension_semantics<parallel>, #tpu.dimension_semantics<parallel>], iteration_bounds = array<i64: 2, 4>, scalar_prefetch = 0 : i64, scratch_operands = 0 : i64, tpu.core_type = #tpu.core_type<tc>, window_params = [{transform_indices = @transform_0, window_bounds = array<i64: 8, 16>}, {transform_indices = @transform_1, window_bounds = array<i64: 1, 16, 2048>}, {transform_indices = @transform_2, window_bounds = array<i64: 1, 8, 4096>}]} {
    %c0 = arith.constant 0 : index
    %c0_0 = arith.constant 0 : index
    %c0_1 = arith.constant 0 : index
    %0 = vector.load %arg3[%c0, %c0_0, %c0_1] : memref<1x16x2048xf32, #tpu.memory_space<vmem>>, vector<1x16x2048xf32>
    %1 = vector.shape_cast %0 : vector<1x16x2048xf32> to vector<16x2048xf32>
    %c0_2 = arith.constant 0 : index
    %c0_3 = arith.constant 0 : index
    %2 = vector.load %arg2[%c0_2, %c0_3] : memref<8x16xf32, #tpu.memory_space<vmem>>, vector<8x16xf32>
    %cst = arith.constant dense<0.000000e+00> : vector<8x2048xf32>
    %3 = tpu.matmul %2, %1, %cst {dimension_numbers = #tpu.dot_dimension_numbers<[1], [0], [0], [1], [0, 0, 1, 1], [], []>} : vector<8x16xf32>, vector<16x2048xf32>, vector<8x2048xf32> -> vector<8x2048xf32>
    %4 = vector.extract_strided_slice %3 {offsets = [0, 0], sizes = [8, 128], strides = [1, 1]} : vector<8x2048xf32> to vector<8x128xf32>
    %c0_4 = arith.constant 0 : index
    %c0_5 = arith.constant 0 : index
    %c0_6 = arith.constant 0 : index
    %5 = vector.load %arg4[%c0_4, %c0_5, %c0_6] : memref<1x8x4096xf32, #tpu.memory_space<vmem>>, vector<1x8x128xf32>
    %6 = vector.shape_cast %5 : vector<1x8x128xf32> to vector<8x128xf32>
    %7 = vector.shape_cast %4 : vector<8x128xf32> to vector<1x8x128xf32>
    tpu.vector_store %arg4[%c0_4, %c0_5, %c0_6], %7 {strides = array<i32>} : memref<1x8x4096xf32, #tpu.memory_space<vmem>>, vector<1x8x128xf32>,
    %8 = vector.extract_strided_slice %3 {offsets = [0, 0], sizes = [8, 128], strides = [1, 1]} : vector<8x2048xf32> to vector<8x128xf32>
    %9 = vector.extract_strided_slice %3 {offsets = [0, 128], sizes = [8, 128], strides = [1, 1]} : vector<8x2048xf32> to vector<8x128xf32>
    %cst_7 = arith.constant 7.500000e-01 : f32
    %10 = vector.broadcast %cst_7 : f32 to vector<8x128xf32>
    %11 = arith.mulf %10, %8 : vector<8x128xf32>
    %cst_8 = arith.constant 2.500000e-01 : f32
    %12 = vector.broadcast %cst_8 : f32 to vector<8x128xf32>
    %13 = arith.mulf %12, %9 : vector<8x128xf32>
    %14 = arith.addf %11, %13 : vector<8x128xf32>
    %c0_9 = arith.constant 0 : index
    %c0_10 = arith.constant 0 : index
    %c128 = arith.constant 128 : index
    %15 = vector.load %arg4[%c0_9, %c0_10, %c128] : memref<1x8x4096xf32, #tpu.memory_space<vmem>>, vector<1x8x128xf32>
    %16 = vector.shape_cast %15 : vector<1x8x128xf32> to vector<8x128xf32>
    %17 = vector.shape_cast %14 : vector<8x128xf32> to vector<1x8x128xf32>
    tpu.vector_store %arg4[%c0_9, %c0_10, %c128], %17 {strides = array<i32>} : memref<1x8x4096xf32, #tpu.memory_space<vmem>>, vector<1x8x128xf32>,
    %18 = vector.extract_strided_slice %3 {offsets = [0, 0], sizes = [8, 128], strides = [1, 1]} : vector<8x2048xf32> to vector<8x128xf32>
    %19 = vector.extract_strided_slice %3 {offsets = [0, 128], sizes = [8, 128], strides = [1, 1]} : vector<8x2048xf32> to vector<8x128xf32>
    %cst_11 = arith.constant 2.500000e-01 : f32
    %20 = vector.broadcast %cst_11 : f32 to vector<8x128xf32>
    %21 = arith.mulf %20, %18 : vector<8x128xf32>
    %cst_12 = arith.constant 7.500000e-01 : f32
    %22 = vector.broadcast %cst_12 : f32 to vector<8x128xf32>
    %23 = arith.mulf %22, %19 : vector<8x128xf32>
    %24 = arith.addf %21, %23 : vector<8x128xf32>
    %c0_13 = arith.constant 0 : index
    %c0_14 = arith.constant 0 : index
    %c256 = arith.constant 256 : index
    %25 = vector.load %arg4[%c0_13, %c0_14, %c256] : memref<1x8x4096xf32, #tpu.memory_space<vmem>>, vector<1x8x128xf32>
    %26 = vector.shape_cast %25 : vector<1x8x128xf32> to vector<8x128xf32>
    %27 = vector.shape_cast %24 : vector<8x128xf32> to vector<1x8x128xf32>
    tpu.vector_store %arg4[%c0_13, %c0_14, %c256], %27 {strides = array<i32>} : memref<1x8x4096xf32, #tpu.memory_space<vmem>>, vector<1x8x128xf32>,
    %28 = vector.extract_strided_slice %3 {offsets = [0, 128], sizes = [8, 128], strides = [1, 1]} : vector<8x2048xf32> to vector<8x128xf32>
    %29 = vector.extract_strided_slice %3 {offsets = [0, 256], sizes = [8, 128], strides = [1, 1]} : vector<8x2048xf32> to vector<8x128xf32>
    %cst_15 = arith.constant 7.500000e-01 : f32
    %30 = vector.broadcast %cst_15 : f32 to vector<8x128xf32>
    %31 = arith.mulf %30, %28 : vector<8x128xf32>
    %cst_16 = arith.constant 2.500000e-01 : f32
    %32 = vector.broadcast %cst_16 : f32 to vector<8x128xf32>
    %33 = arith.mulf %32, %29 : vector<8x128xf32>
    %34 = arith.addf %31, %33 : vector<8x128xf32>
    %c0_17 = arith.constant 0 : index
    %c0_18 = arith.constant 0 : index
    %c384 = arith.constant 384 : index
    %35 = vector.load %arg4[%c0_17, %c0_18, %c384] : memref<1x8x4096xf32, #tpu.memory_space<vmem>>, vector<1x8x128xf32>
    %36 = vector.shape_cast %35 : vector<1x8x128xf32> to vector<8x128xf32>
    %37 = vector.shape_cast %34 : vector<8x128xf32> to vector<1x8x128xf32>
    tpu.vector_store %arg4[%c0_17, %c0_18, %c384], %37 {strides = array<i32>} : memref<1x8x4096xf32, #tpu.memory_space<vmem>>, vector<1x8x128xf32>,
    %38 = vector.extract_strided_slice %3 {offsets = [0, 128], sizes = [8, 128], strides = [1, 1]} : vector<8x2048xf32> to vector<8x128xf32>
    %39 = vector.extract_strided_slice %3 {offsets = [0, 256], sizes = [8, 128], strides = [1, 1]} : vector<8x2048xf32> to vector<8x128xf32>
    %cst_19 = arith.constant 2.500000e-01 : f32
    %40 = vector.broadcast %cst_19 : f32 to vector<8x128xf32>
    %41 = arith.mulf %40, %38 : vector<8x128xf32>
    %cst_20 = arith.constant 7.500000e-01 : f32
    %42 = vector.broadcast %cst_20 : f32 to vector<8x128xf32>
    %43 = arith.mulf %42, %39 : vector<8x128xf32>
    %44 = arith.addf %41, %43 : vector<8x128xf32>
    %c0_21 = arith.constant 0 : index
    %c0_22 = arith.constant 0 : index
    %c512 = arith.constant 512 : index
    %45 = vector.load %arg4[%c0_21, %c0_22, %c512] : memref<1x8x4096xf32, #tpu.memory_space<vmem>>, vector<1x8x128xf32>
    %46 = vector.shape_cast %45 : vector<1x8x128xf32> to vector<8x128xf32>
    %47 = vector.shape_cast %44 : vector<8x128xf32> to vector<1x8x128xf32>
    tpu.vector_store %arg4[%c0_21, %c0_22, %c512], %47 {strides = array<i32>} : memref<1x8x4096xf32, #tpu.memory_space<vmem>>, vector<1x8x128xf32>,
    %48 = vector.extract_strided_slice %3 {offsets = [0, 256], sizes = [8, 128], strides = [1, 1]} : vector<8x2048xf32> to vector<8x128xf32>
    %49 = vector.extract_strided_slice %3 {offsets = [0, 384], sizes = [8, 128], strides = [1, 1]} : vector<8x2048xf32> to vector<8x128xf32>
    %cst_23 = arith.constant 7.500000e-01 : f32
    %50 = vector.broadcast %cst_23 : f32 to vector<8x128xf32>
    %51 = arith.mulf %50, %48 : vector<8x128xf32>
    %cst_24 = arith.constant 2.500000e-01 : f32
    %52 = vector.broadcast %cst_24 : f32 to vector<8x128xf32>
    %53 = arith.mulf %52, %49 : vector<8x128xf32>
    %54 = arith.addf %51, %53 : vector<8x128xf32>
    %c0_25 = arith.constant 0 : index
    %c0_26 = arith.constant 0 : index
    %c640 = arith.constant 640 : index
    %55 = vector.load %arg4[%c0_25, %c0_26, %c640] : memref<1x8x4096xf32, #tpu.memory_space<vmem>>, vector<1x8x128xf32>
    %56 = vector.shape_cast %55 : vector<1x8x128xf32> to vector<8x128xf32>
    %57 = vector.shape_cast %54 : vector<8x128xf32> to vector<1x8x128xf32>
    tpu.vector_store %arg4[%c0_25, %c0_26, %c640], %57 {strides = array<i32>} : memref<1x8x4096xf32, #tpu.memory_space<vmem>>, vector<1x8x128xf32>,
    %58 = vector.extract_strided_slice %3 {offsets = [0, 256], sizes = [8, 128], strides = [1, 1]} : vector<8x2048xf32> to vector<8x128xf32>
    %59 = vector.extract_strided_slice %3 {offsets = [0, 384], sizes = [8, 128], strides = [1, 1]} : vector<8x2048xf32> to vector<8x128xf32>
    %cst_27 = arith.constant 2.500000e-01 : f32
    %60 = vector.broadcast %cst_27 : f32 to vector<8x128xf32>
    %61 = arith.mulf %60, %58 : vector<8x128xf32>
    %cst_28 = arith.constant 7.500000e-01 : f32
    %62 = vector.broadcast %cst_28 : f32 to vector<8x128xf32>
    %63 = arith.mulf %62, %59 : vector<8x128xf32>
    %64 = arith.addf %61, %63 : vector<8x128xf32>
    %c0_29 = arith.constant 0 : index
    %c0_30 = arith.constant 0 : index
    %c768 = arith.constant 768 : index
    %65 = vector.load %arg4[%c0_29, %c0_30, %c768] : memref<1x8x4096xf32, #tpu.memory_space<vmem>>, vector<1x8x128xf32>
    %66 = vector.shape_cast %65 : vector<1x8x128xf32> to vector<8x128xf32>
    %67 = vector.shape_cast %64 : vector<8x128xf32> to vector<1x8x128xf32>
    tpu.vector_store %arg4[%c0_29, %c0_30, %c768], %67 {strides = array<i32>} : memref<1x8x4096xf32, #tpu.memory_space<vmem>>, vector<1x8x128xf32>,
    %68 = vector.extract_strided_slice %3 {offsets = [0, 384], sizes = [8, 128], strides = [1, 1]} : vector<8x2048xf32> to vector<8x128xf32>
    %69 = vector.extract_strided_slice %3 {offsets = [0, 512], sizes = [8, 128], strides = [1, 1]} : vector<8x2048xf32> to vector<8x128xf32>
    %cst_31 = arith.constant 7.500000e-01 : f32
    %70 = vector.broadcast %cst_31 : f32 to vector<8x128xf32>
    %71 = arith.mulf %70, %68 : vector<8x128xf32>
    %cst_32 = arith.constant 2.500000e-01 : f32
    %72 = vector.broadcast %cst_32 : f32 to vector<8x128xf32>
    %73 = arith.mulf %72, %69 : vector<8x128xf32>
    %74 = arith.addf %71, %73 : vector<8x128xf32>
    %c0_33 = arith.constant 0 : index
    %c0_34 = arith.constant 0 : index
    %c896 = arith.constant 896 : index
    %75 = vector.load %arg4[%c0_33, %c0_34, %c896] : memref<1x8x4096xf32, #tpu.memory_space<vmem>>, vector<1x8x128xf32>
    %76 = vector.shape_cast %75 : vector<1x8x128xf32> to vector<8x128xf32>
    %77 = vector.shape_cast %74 : vector<8x128xf32> to vector<1x8x128xf32>
    tpu.vector_store %arg4[%c0_33, %c0_34, %c896], %77 {strides = array<i32>} : memref<1x8x4096xf32, #tpu.memory_space<vmem>>, vector<1x8x128xf32>,
    %78 = vector.extract_strided_slice %3 {offsets = [0, 384], sizes = [8, 128], strides = [1, 1]} : vector<8x2048xf32> to vector<8x128xf32>
    %79 = vector.extract_strided_slice %3 {offsets = [0, 512], sizes = [8, 128], strides = [1, 1]} : vector<8x2048xf32> to vector<8x128xf32>
    %cst_35 = arith.constant 2.500000e-01 : f32
    %80 = vector.broadcast %cst_35 : f32 to vector<8x128xf32>
    %81 = arith.mulf %80, %78 : vector<8x128xf32>
    %cst_36 = arith.constant 7.500000e-01 : f32
    %82 = vector.broadcast %cst_36 : f32 to vector<8x128xf32>
    %83 = arith.mulf %82, %79 : vector<8x128xf32>
    %84 = arith.addf %81, %83 : vector<8x128xf32>
    %c0_37 = arith.constant 0 : index
    %c0_38 = arith.constant 0 : index
    %c1024 = arith.constant 1024 : index
    %85 = vector.load %arg4[%c0_37, %c0_38, %c1024] : memref<1x8x4096xf32, #tpu.memory_space<vmem>>, vector<1x8x128xf32>
    %86 = vector.shape_cast %85 : vector<1x8x128xf32> to vector<8x128xf32>
    %87 = vector.shape_cast %84 : vector<8x128xf32> to vector<1x8x128xf32>
    tpu.vector_store %arg4[%c0_37, %c0_38, %c1024], %87 {strides = array<i32>} : memref<1x8x4096xf32, #tpu.memory_space<vmem>>, vector<1x8x128xf32>,
    %88 = vector.extract_strided_slice %3 {offsets = [0, 512], sizes = [8, 128], strides = [1, 1]} : vector<8x2048xf32> to vector<8x128xf32>
    %89 = vector.extract_strided_slice %3 {offsets = [0, 640], sizes = [8, 128], strides = [1, 1]} : vector<8x2048xf32> to vector<8x128xf32>
    %cst_39 = arith.constant 7.500000e-01 : f32
    %90 = vector.broadcast %cst_39 : f32 to vector<8x128xf32>
    %91 = arith.mulf %90, %88 : vector<8x128xf32>
    %cst_40 = arith.constant 2.500000e-01 : f32
    %92 = vector.broadcast %cst_40 : f32 to vector<8x128xf32>
    %93 = arith.mulf %92, %89 : vector<8x128xf32>
    %94 = arith.addf %91, %93 : vector<8x128xf32>
    %c0_41 = arith.constant 0 : index
    %c0_42 = arith.constant 0 : index
    %c1152 = arith.constant 1152 : index
    %95 = vector.load %arg4[%c0_41, %c0_42, %c1152] : memref<1x8x4096xf32, #tpu.memory_space<vmem>>, vector<1x8x128xf32>
    %96 = vector.shape_cast %95 : vector<1x8x128xf32> to vector<8x128xf32>
    %97 = vector.shape_cast %94 : vector<8x128xf32> to vector<1x8x128xf32>
    tpu.vector_store %arg4[%c0_41, %c0_42, %c1152], %97 {strides = array<i32>} : memref<1x8x4096xf32, #tpu.memory_space<vmem>>, vector<1x8x128xf32>,
    %98 = vector.extract_strided_slice %3 {offsets = [0, 512], sizes = [8, 128], strides = [1, 1]} : vector<8x2048xf32> to vector<8x128xf32>
    %99 = vector.extract_strided_slice %3 {offsets = [0, 640], sizes = [8, 128], strides = [1, 1]} : vector<8x2048xf32> to vector<8x128xf32>
    %cst_43 = arith.constant 2.500000e-01 : f32
    %100 = vector.broadcast %cst_43 : f32 to vector<8x128xf32>
    %101 = arith.mulf %100, %98 : vector<8x128xf32>
    %cst_44 = arith.constant 7.500000e-01 : f32
    %102 = vector.broadcast %cst_44 : f32 to vector<8x128xf32>
    %103 = arith.mulf %102, %99 : vector<8x128xf32>
    %104 = arith.addf %101, %103 : vector<8x128xf32>
    %c0_45 = arith.constant 0 : index
    %c0_46 = arith.constant 0 : index
    %c1280 = arith.constant 1280 : index
    %105 = vector.load %arg4[%c0_45, %c0_46, %c1280] : memref<1x8x4096xf32, #tpu.memory_space<vmem>>, vector<1x8x128xf32>
    %106 = vector.shape_cast %105 : vector<1x8x128xf32> to vector<8x128xf32>
    %107 = vector.shape_cast %104 : vector<8x128xf32> to vector<1x8x128xf32>
    tpu.vector_store %arg4[%c0_45, %c0_46, %c1280], %107 {strides = array<i32>} : memref<1x8x4096xf32, #tpu.memory_space<vmem>>, vector<1x8x128xf32>,
    %108 = vector.extract_strided_slice %3 {offsets = [0, 640], sizes = [8, 128], strides = [1, 1]} : vector<8x2048xf32> to vector<8x128xf32>
    %109 = vector.extract_strided_slice %3 {offsets = [0, 768], sizes = [8, 128], strides = [1, 1]} : vector<8x2048xf32> to vector<8x128xf32>
    %cst_47 = arith.constant 7.500000e-01 : f32
    %110 = vector.broadcast %cst_47 : f32 to vector<8x128xf32>
    %111 = arith.mulf %110, %108 : vector<8x128xf32>
    %cst_48 = arith.constant 2.500000e-01 : f32
    %112 = vector.broadcast %cst_48 : f32 to vector<8x128xf32>
    %113 = arith.mulf %112, %109 : vector<8x128xf32>
    %114 = arith.addf %111, %113 : vector<8x128xf32>
    %c0_49 = arith.constant 0 : index
    %c0_50 = arith.constant 0 : index
    %c1408 = arith.constant 1408 : index
    %115 = vector.load %arg4[%c0_49, %c0_50, %c1408] : memref<1x8x4096xf32, #tpu.memory_space<vmem>>, vector<1x8x128xf32>
    %116 = vector.shape_cast %115 : vector<1x8x128xf32> to vector<8x128xf32>
    %117 = vector.shape_cast %114 : vector<8x128xf32> to vector<1x8x128xf32>
    tpu.vector_store %arg4[%c0_49, %c0_50, %c1408], %117 {strides = array<i32>} : memref<1x8x4096xf32, #tpu.memory_space<vmem>>, vector<1x8x128xf32>,
    %118 = vector.extract_strided_slice %3 {offsets = [0, 640], sizes = [8, 128], strides = [1, 1]} : vector<8x2048xf32> to vector<8x128xf32>
    %119 = vector.extract_strided_slice %3 {offsets = [0, 768], sizes = [8, 128], strides = [1, 1]} : vector<8x2048xf32> to vector<8x128xf32>
    %cst_51 = arith.constant 2.500000e-01 : f32
    %120 = vector.broadcast %cst_51 : f32 to vector<8x128xf32>
    %121 = arith.mulf %120, %118 : vector<8x128xf32>
    %cst_52 = arith.constant 7.500000e-01 : f32
    %122 = vector.broadcast %cst_52 : f32 to vector<8x128xf32>
    %123 = arith.mulf %122, %119 : vector<8x128xf32>
    %124 = arith.addf %121, %123 : vector<8x128xf32>
    %c0_53 = arith.constant 0 : index
    %c0_54 = arith.constant 0 : index
    %c1536 = arith.constant 1536 : index
    %125 = vector.load %arg4[%c0_53, %c0_54, %c1536] : memref<1x8x4096xf32, #tpu.memory_space<vmem>>, vector<1x8x128xf32>
    %126 = vector.shape_cast %125 : vector<1x8x128xf32> to vector<8x128xf32>
    %127 = vector.shape_cast %124 : vector<8x128xf32> to vector<1x8x128xf32>
    tpu.vector_store %arg4[%c0_53, %c0_54, %c1536], %127 {strides = array<i32>} : memref<1x8x4096xf32, #tpu.memory_space<vmem>>, vector<1x8x128xf32>,
    %128 = vector.extract_strided_slice %3 {offsets = [0, 768], sizes = [8, 128], strides = [1, 1]} : vector<8x2048xf32> to vector<8x128xf32>
    %129 = vector.extract_strided_slice %3 {offsets = [0, 896], sizes = [8, 128], strides = [1, 1]} : vector<8x2048xf32> to vector<8x128xf32>
    %cst_55 = arith.constant 7.500000e-01 : f32
    %130 = vector.broadcast %cst_55 : f32 to vector<8x128xf32>
    %131 = arith.mulf %130, %128 : vector<8x128xf32>
    %cst_56 = arith.constant 2.500000e-01 : f32
    %132 = vector.broadcast %cst_56 : f32 to vector<8x128xf32>
    %133 = arith.mulf %132, %129 : vector<8x128xf32>
    %134 = arith.addf %131, %133 : vector<8x128xf32>
    %c0_57 = arith.constant 0 : index
    %c0_58 = arith.constant 0 : index
    %c1664 = arith.constant 1664 : index
    %135 = vector.load %arg4[%c0_57, %c0_58, %c1664] : memref<1x8x4096xf32, #tpu.memory_space<vmem>>, vector<1x8x128xf32>
    %136 = vector.shape_cast %135 : vector<1x8x128xf32> to vector<8x128xf32>
    %137 = vector.shape_cast %134 : vector<8x128xf32> to vector<1x8x128xf32>
    tpu.vector_store %arg4[%c0_57, %c0_58, %c1664], %137 {strides = array<i32>} : memref<1x8x4096xf32, #tpu.memory_space<vmem>>, vector<1x8x128xf32>,
    %138 = vector.extract_strided_slice %3 {offsets = [0, 768], sizes = [8, 128], strides = [1, 1]} : vector<8x2048xf32> to vector<8x128xf32>
    %139 = vector.extract_strided_slice %3 {offsets = [0, 896], sizes = [8, 128], strides = [1, 1]} : vector<8x2048xf32> to vector<8x128xf32>
    %cst_59 = arith.constant 2.500000e-01 : f32
    %140 = vector.broadcast %cst_59 : f32 to vector<8x128xf32>
    %141 = arith.mulf %140, %138 : vector<8x128xf32>
    %cst_60 = arith.constant 7.500000e-01 : f32
    %142 = vector.broadcast %cst_60 : f32 to vector<8x128xf32>
    %143 = arith.mulf %142, %139 : vector<8x128xf32>
    %144 = arith.addf %141, %143 : vector<8x128xf32>
    %c0_61 = arith.constant 0 : index
    %c0_62 = arith.constant 0 : index
    %c1792 = arith.constant 1792 : index
    %145 = vector.load %arg4[%c0_61, %c0_62, %c1792] : memref<1x8x4096xf32, #tpu.memory_space<vmem>>, vector<1x8x128xf32>
    %146 = vector.shape_cast %145 : vector<1x8x128xf32> to vector<8x128xf32>
    %147 = vector.shape_cast %144 : vector<8x128xf32> to vector<1x8x128xf32>
    tpu.vector_store %arg4[%c0_61, %c0_62, %c1792], %147 {strides = array<i32>} : memref<1x8x4096xf32, #tpu.memory_space<vmem>>, vector<1x8x128xf32>,
    %148 = vector.extract_strided_slice %3 {offsets = [0, 896], sizes = [8, 128], strides = [1, 1]} : vector<8x2048xf32> to vector<8x128xf32>
    %149 = vector.extract_strided_slice %3 {offsets = [0, 1024], sizes = [8, 128], strides = [1, 1]} : vector<8x2048xf32> to vector<8x128xf32>
    %cst_63 = arith.constant 7.500000e-01 : f32
    %150 = vector.broadcast %cst_63 : f32 to vector<8x128xf32>
    %151 = arith.mulf %150, %148 : vector<8x128xf32>
    %cst_64 = arith.constant 2.500000e-01 : f32
    %152 = vector.broadcast %cst_64 : f32 to vector<8x128xf32>
    %153 = arith.mulf %152, %149 : vector<8x128xf32>
    %154 = arith.addf %151, %153 : vector<8x128xf32>
    %c0_65 = arith.constant 0 : index
    %c0_66 = arith.constant 0 : index
    %c1920 = arith.constant 1920 : index
    %155 = vector.load %arg4[%c0_65, %c0_66, %c1920] : memref<1x8x4096xf32, #tpu.memory_space<vmem>>, vector<1x8x128xf32>
    %156 = vector.shape_cast %155 : vector<1x8x128xf32> to vector<8x128xf32>
    %157 = vector.shape_cast %154 : vector<8x128xf32> to vector<1x8x128xf32>
    tpu.vector_store %arg4[%c0_65, %c0_66, %c1920], %157 {strides = array<i32>} : memref<1x8x4096xf32, #tpu.memory_space<vmem>>, vector<1x8x128xf32>,
    %158 = vector.extract_strided_slice %3 {offsets = [0, 896], sizes = [8, 128], strides = [1, 1]} : vector<8x2048xf32> to vector<8x128xf32>
    %159 = vector.extract_strided_slice %3 {offsets = [0, 1024], sizes = [8, 128], strides = [1, 1]} : vector<8x2048xf32> to vector<8x128xf32>
    %cst_67 = arith.constant 2.500000e-01 : f32
    %160 = vector.broadcast %cst_67 : f32 to vector<8x128xf32>
    %161 = arith.mulf %160, %158 : vector<8x128xf32>
    %cst_68 = arith.constant 7.500000e-01 : f32
    %162 = vector.broadcast %cst_68 : f32 to vector<8x128xf32>
    %163 = arith.mulf %162, %159 : vector<8x128xf32>
    %164 = arith.addf %161, %163 : vector<8x128xf32>
    %c0_69 = arith.constant 0 : index
    %c0_70 = arith.constant 0 : index
    %c2048 = arith.constant 2048 : index
    %165 = vector.load %arg4[%c0_69, %c0_70, %c2048] : memref<1x8x4096xf32, #tpu.memory_space<vmem>>, vector<1x8x128xf32>
    %166 = vector.shape_cast %165 : vector<1x8x128xf32> to vector<8x128xf32>
    %167 = vector.shape_cast %164 : vector<8x128xf32> to vector<1x8x128xf32>
    tpu.vector_store %arg4[%c0_69, %c0_70, %c2048], %167 {strides = array<i32>} : memref<1x8x4096xf32, #tpu.memory_space<vmem>>, vector<1x8x128xf32>,
    %168 = vector.extract_strided_slice %3 {offsets = [0, 1024], sizes = [8, 128], strides = [1, 1]} : vector<8x2048xf32> to vector<8x128xf32>
    %169 = vector.extract_strided_slice %3 {offsets = [0, 1152], sizes = [8, 128], strides = [1, 1]} : vector<8x2048xf32> to vector<8x128xf32>
    %cst_71 = arith.constant 7.500000e-01 : f32
    %170 = vector.broadcast %cst_71 : f32 to vector<8x128xf32>
    %171 = arith.mulf %170, %168 : vector<8x128xf32>
    %cst_72 = arith.constant 2.500000e-01 : f32
    %172 = vector.broadcast %cst_72 : f32 to vector<8x128xf32>
    %173 = arith.mulf %172, %169 : vector<8x128xf32>
    %174 = arith.addf %171, %173 : vector<8x128xf32>
    %c0_73 = arith.constant 0 : index
    %c0_74 = arith.constant 0 : index
    %c2176 = arith.constant 2176 : index
    %175 = vector.load %arg4[%c0_73, %c0_74, %c2176] : memref<1x8x4096xf32, #tpu.memory_space<vmem>>, vector<1x8x128xf32>
    %176 = vector.shape_cast %175 : vector<1x8x128xf32> to vector<8x128xf32>
    %177 = vector.shape_cast %174 : vector<8x128xf32> to vector<1x8x128xf32>
    tpu.vector_store %arg4[%c0_73, %c0_74, %c2176], %177 {strides = array<i32>} : memref<1x8x4096xf32, #tpu.memory_space<vmem>>, vector<1x8x128xf32>,
    %178 = vector.extract_strided_slice %3 {offsets = [0, 1024], sizes = [8, 128], strides = [1, 1]} : vector<8x2048xf32> to vector<8x128xf32>
    %179 = vector.extract_strided_slice %3 {offsets = [0, 1152], sizes = [8, 128], strides = [1, 1]} : vector<8x2048xf32> to vector<8x128xf32>
    %cst_75 = arith.constant 2.500000e-01 : f32
    %180 = vector.broadcast %cst_75 : f32 to vector<8x128xf32>
    %181 = arith.mulf %180, %178 : vector<8x128xf32>
    %cst_76 = arith.constant 7.500000e-01 : f32
    %182 = vector.broadcast %cst_76 : f32 to vector<8x128xf32>
    %183 = arith.mulf %182, %179 : vector<8x128xf32>
    %184 = arith.addf %181, %183 : vector<8x128xf32>
    %c0_77 = arith.constant 0 : index
    %c0_78 = arith.constant 0 : index
    %c2304 = arith.constant 2304 : index
    %185 = vector.load %arg4[%c0_77, %c0_78, %c2304] : memref<1x8x4096xf32, #tpu.memory_space<vmem>>, vector<1x8x128xf32>
    %186 = vector.shape_cast %185 : vector<1x8x128xf32> to vector<8x128xf32>
    %187 = vector.shape_cast %184 : vector<8x128xf32> to vector<1x8x128xf32>
    tpu.vector_store %arg4[%c0_77, %c0_78, %c2304], %187 {strides = array<i32>} : memref<1x8x4096xf32, #tpu.memory_space<vmem>>, vector<1x8x128xf32>,
    %188 = vector.extract_strided_slice %3 {offsets = [0, 1152], sizes = [8, 128], strides = [1, 1]} : vector<8x2048xf32> to vector<8x128xf32>
    %189 = vector.extract_strided_slice %3 {offsets = [0, 1280], sizes = [8, 128], strides = [1, 1]} : vector<8x2048xf32> to vector<8x128xf32>
    %cst_79 = arith.constant 7.500000e-01 : f32
    %190 = vector.broadcast %cst_79 : f32 to vector<8x128xf32>
    %191 = arith.mulf %190, %188 : vector<8x128xf32>
    %cst_80 = arith.constant 2.500000e-01 : f32
    %192 = vector.broadcast %cst_80 : f32 to vector<8x128xf32>
    %193 = arith.mulf %192, %189 : vector<8x128xf32>
    %194 = arith.addf %191, %193 : vector<8x128xf32>
    %c0_81 = arith.constant 0 : index
    %c0_82 = arith.constant 0 : index
    %c2432 = arith.constant 2432 : index
    %195 = vector.load %arg4[%c0_81, %c0_82, %c2432] : memref<1x8x4096xf32, #tpu.memory_space<vmem>>, vector<1x8x128xf32>
    %196 = vector.shape_cast %195 : vector<1x8x128xf32> to vector<8x128xf32>
    %197 = vector.shape_cast %194 : vector<8x128xf32> to vector<1x8x128xf32>
    tpu.vector_store %arg4[%c0_81, %c0_82, %c2432], %197 {strides = array<i32>} : memref<1x8x4096xf32, #tpu.memory_space<vmem>>, vector<1x8x128xf32>,
    %198 = vector.extract_strided_slice %3 {offsets = [0, 1152], sizes = [8, 128], strides = [1, 1]} : vector<8x2048xf32> to vector<8x128xf32>
    %199 = vector.extract_strided_slice %3 {offsets = [0, 1280], sizes = [8, 128], strides = [1, 1]} : vector<8x2048xf32> to vector<8x128xf32>
    %cst_83 = arith.constant 2.500000e-01 : f32
    %200 = vector.broadcast %cst_83 : f32 to vector<8x128xf32>
    %201 = arith.mulf %200, %198 : vector<8x128xf32>
    %cst_84 = arith.constant 7.500000e-01 : f32
    %202 = vector.broadcast %cst_84 : f32 to vector<8x128xf32>
    %203 = arith.mulf %202, %199 : vector<8x128xf32>
    %204 = arith.addf %201, %203 : vector<8x128xf32>
    %c0_85 = arith.constant 0 : index
    %c0_86 = arith.constant 0 : index
    %c2560 = arith.constant 2560 : index
    %205 = vector.load %arg4[%c0_85, %c0_86, %c2560] : memref<1x8x4096xf32, #tpu.memory_space<vmem>>, vector<1x8x128xf32>
    %206 = vector.shape_cast %205 : vector<1x8x128xf32> to vector<8x128xf32>
    %207 = vector.shape_cast %204 : vector<8x128xf32> to vector<1x8x128xf32>
    tpu.vector_store %arg4[%c0_85, %c0_86, %c2560], %207 {strides = array<i32>} : memref<1x8x4096xf32, #tpu.memory_space<vmem>>, vector<1x8x128xf32>,
    %208 = vector.extract_strided_slice %3 {offsets = [0, 1280], sizes = [8, 128], strides = [1, 1]} : vector<8x2048xf32> to vector<8x128xf32>
    %209 = vector.extract_strided_slice %3 {offsets = [0, 1408], sizes = [8, 128], strides = [1, 1]} : vector<8x2048xf32> to vector<8x128xf32>
    %cst_87 = arith.constant 7.500000e-01 : f32
    %210 = vector.broadcast %cst_87 : f32 to vector<8x128xf32>
    %211 = arith.mulf %210, %208 : vector<8x128xf32>
    %cst_88 = arith.constant 2.500000e-01 : f32
    %212 = vector.broadcast %cst_88 : f32 to vector<8x128xf32>
    %213 = arith.mulf %212, %209 : vector<8x128xf32>
    %214 = arith.addf %211, %213 : vector<8x128xf32>
    %c0_89 = arith.constant 0 : index
    %c0_90 = arith.constant 0 : index
    %c2688 = arith.constant 2688 : index
    %215 = vector.load %arg4[%c0_89, %c0_90, %c2688] : memref<1x8x4096xf32, #tpu.memory_space<vmem>>, vector<1x8x128xf32>
    %216 = vector.shape_cast %215 : vector<1x8x128xf32> to vector<8x128xf32>
    %217 = vector.shape_cast %214 : vector<8x128xf32> to vector<1x8x128xf32>
    tpu.vector_store %arg4[%c0_89, %c0_90, %c2688], %217 {strides = array<i32>} : memref<1x8x4096xf32, #tpu.memory_space<vmem>>, vector<1x8x128xf32>,
    %218 = vector.extract_strided_slice %3 {offsets = [0, 1280], sizes = [8, 128], strides = [1, 1]} : vector<8x2048xf32> to vector<8x128xf32>
    %219 = vector.extract_strided_slice %3 {offsets = [0, 1408], sizes = [8, 128], strides = [1, 1]} : vector<8x2048xf32> to vector<8x128xf32>
    %cst_91 = arith.constant 2.500000e-01 : f32
    %220 = vector.broadcast %cst_91 : f32 to vector<8x128xf32>
    %221 = arith.mulf %220, %218 : vector<8x128xf32>
    %cst_92 = arith.constant 7.500000e-01 : f32
    %222 = vector.broadcast %cst_92 : f32 to vector<8x128xf32>
    %223 = arith.mulf %222, %219 : vector<8x128xf32>
    %224 = arith.addf %221, %223 : vector<8x128xf32>
    %c0_93 = arith.constant 0 : index
    %c0_94 = arith.constant 0 : index
    %c2816 = arith.constant 2816 : index
    %225 = vector.load %arg4[%c0_93, %c0_94, %c2816] : memref<1x8x4096xf32, #tpu.memory_space<vmem>>, vector<1x8x128xf32>
    %226 = vector.shape_cast %225 : vector<1x8x128xf32> to vector<8x128xf32>
    %227 = vector.shape_cast %224 : vector<8x128xf32> to vector<1x8x128xf32>
    tpu.vector_store %arg4[%c0_93, %c0_94, %c2816], %227 {strides = array<i32>} : memref<1x8x4096xf32, #tpu.memory_space<vmem>>, vector<1x8x128xf32>,
    %228 = vector.extract_strided_slice %3 {offsets = [0, 1408], sizes = [8, 128], strides = [1, 1]} : vector<8x2048xf32> to vector<8x128xf32>
    %229 = vector.extract_strided_slice %3 {offsets = [0, 1536], sizes = [8, 128], strides = [1, 1]} : vector<8x2048xf32> to vector<8x128xf32>
    %cst_95 = arith.constant 7.500000e-01 : f32
    %230 = vector.broadcast %cst_95 : f32 to vector<8x128xf32>
    %231 = arith.mulf %230, %228 : vector<8x128xf32>
    %cst_96 = arith.constant 2.500000e-01 : f32
    %232 = vector.broadcast %cst_96 : f32 to vector<8x128xf32>
    %233 = arith.mulf %232, %229 : vector<8x128xf32>
    %234 = arith.addf %231, %233 : vector<8x128xf32>
    %c0_97 = arith.constant 0 : index
    %c0_98 = arith.constant 0 : index
    %c2944 = arith.constant 2944 : index
    %235 = vector.load %arg4[%c0_97, %c0_98, %c2944] : memref<1x8x4096xf32, #tpu.memory_space<vmem>>, vector<1x8x128xf32>
    %236 = vector.shape_cast %235 : vector<1x8x128xf32> to vector<8x128xf32>
    %237 = vector.shape_cast %234 : vector<8x128xf32> to vector<1x8x128xf32>
    tpu.vector_store %arg4[%c0_97, %c0_98, %c2944], %237 {strides = array<i32>} : memref<1x8x4096xf32, #tpu.memory_space<vmem>>, vector<1x8x128xf32>,
    %238 = vector.extract_strided_slice %3 {offsets = [0, 1408], sizes = [8, 128], strides = [1, 1]} : vector<8x2048xf32> to vector<8x128xf32>
    %239 = vector.extract_strided_slice %3 {offsets = [0, 1536], sizes = [8, 128], strides = [1, 1]} : vector<8x2048xf32> to vector<8x128xf32>
    %cst_99 = arith.constant 2.500000e-01 : f32
    %240 = vector.broadcast %cst_99 : f32 to vector<8x128xf32>
    %241 = arith.mulf %240, %238 : vector<8x128xf32>
    %cst_100 = arith.constant 7.500000e-01 : f32
    %242 = vector.broadcast %cst_100 : f32 to vector<8x128xf32>
    %243 = arith.mulf %242, %239 : vector<8x128xf32>
    %244 = arith.addf %241, %243 : vector<8x128xf32>
    %c0_101 = arith.constant 0 : index
    %c0_102 = arith.constant 0 : index
    %c3072 = arith.constant 3072 : index
    %245 = vector.load %arg4[%c0_101, %c0_102, %c3072] : memref<1x8x4096xf32, #tpu.memory_space<vmem>>, vector<1x8x128xf32>
    %246 = vector.shape_cast %245 : vector<1x8x128xf32> to vector<8x128xf32>
    %247 = vector.shape_cast %244 : vector<8x128xf32> to vector<1x8x128xf32>
    tpu.vector_store %arg4[%c0_101, %c0_102, %c3072], %247 {strides = array<i32>} : memref<1x8x4096xf32, #tpu.memory_space<vmem>>, vector<1x8x128xf32>,
    %248 = vector.extract_strided_slice %3 {offsets = [0, 1536], sizes = [8, 128], strides = [1, 1]} : vector<8x2048xf32> to vector<8x128xf32>
    %249 = vector.extract_strided_slice %3 {offsets = [0, 1664], sizes = [8, 128], strides = [1, 1]} : vector<8x2048xf32> to vector<8x128xf32>
    %cst_103 = arith.constant 7.500000e-01 : f32
    %250 = vector.broadcast %cst_103 : f32 to vector<8x128xf32>
    %251 = arith.mulf %250, %248 : vector<8x128xf32>
    %cst_104 = arith.constant 2.500000e-01 : f32
    %252 = vector.broadcast %cst_104 : f32 to vector<8x128xf32>
    %253 = arith.mulf %252, %249 : vector<8x128xf32>
    %254 = arith.addf %251, %253 : vector<8x128xf32>
    %c0_105 = arith.constant 0 : index
    %c0_106 = arith.constant 0 : index
    %c3200 = arith.constant 3200 : index
    %255 = vector.load %arg4[%c0_105, %c0_106, %c3200] : memref<1x8x4096xf32, #tpu.memory_space<vmem>>, vector<1x8x128xf32>
    %256 = vector.shape_cast %255 : vector<1x8x128xf32> to vector<8x128xf32>
    %257 = vector.shape_cast %254 : vector<8x128xf32> to vector<1x8x128xf32>
    tpu.vector_store %arg4[%c0_105, %c0_106, %c3200], %257 {strides = array<i32>} : memref<1x8x4096xf32, #tpu.memory_space<vmem>>, vector<1x8x128xf32>,
    %258 = vector.extract_strided_slice %3 {offsets = [0, 1536], sizes = [8, 128], strides = [1, 1]} : vector<8x2048xf32> to vector<8x128xf32>
    %259 = vector.extract_strided_slice %3 {offsets = [0, 1664], sizes = [8, 128], strides = [1, 1]} : vector<8x2048xf32> to vector<8x128xf32>
    %cst_107 = arith.constant 2.500000e-01 : f32
    %260 = vector.broadcast %cst_107 : f32 to vector<8x128xf32>
    %261 = arith.mulf %260, %258 : vector<8x128xf32>
    %cst_108 = arith.constant 7.500000e-01 : f32
    %262 = vector.broadcast %cst_108 : f32 to vector<8x128xf32>
    %263 = arith.mulf %262, %259 : vector<8x128xf32>
    %264 = arith.addf %261, %263 : vector<8x128xf32>
    %c0_109 = arith.constant 0 : index
    %c0_110 = arith.constant 0 : index
    %c3328 = arith.constant 3328 : index
    %265 = vector.load %arg4[%c0_109, %c0_110, %c3328] : memref<1x8x4096xf32, #tpu.memory_space<vmem>>, vector<1x8x128xf32>
    %266 = vector.shape_cast %265 : vector<1x8x128xf32> to vector<8x128xf32>
    %267 = vector.shape_cast %264 : vector<8x128xf32> to vector<1x8x128xf32>
    tpu.vector_store %arg4[%c0_109, %c0_110, %c3328], %267 {strides = array<i32>} : memref<1x8x4096xf32, #tpu.memory_space<vmem>>, vector<1x8x128xf32>,
    %268 = vector.extract_strided_slice %3 {offsets = [0, 1664], sizes = [8, 128], strides = [1, 1]} : vector<8x2048xf32> to vector<8x128xf32>
    %269 = vector.extract_strided_slice %3 {offsets = [0, 1792], sizes = [8, 128], strides = [1, 1]} : vector<8x2048xf32> to vector<8x128xf32>
    %cst_111 = arith.constant 7.500000e-01 : f32
    %270 = vector.broadcast %cst_111 : f32 to vector<8x128xf32>
    %271 = arith.mulf %270, %268 : vector<8x128xf32>
    %cst_112 = arith.constant 2.500000e-01 : f32
    %272 = vector.broadcast %cst_112 : f32 to vector<8x128xf32>
    %273 = arith.mulf %272, %269 : vector<8x128xf32>
    %274 = arith.addf %271, %273 : vector<8x128xf32>
    %c0_113 = arith.constant 0 : index
    %c0_114 = arith.constant 0 : index
    %c3456 = arith.constant 3456 : index
    %275 = vector.load %arg4[%c0_113, %c0_114, %c3456] : memref<1x8x4096xf32, #tpu.memory_space<vmem>>, vector<1x8x128xf32>
    %276 = vector.shape_cast %275 : vector<1x8x128xf32> to vector<8x128xf32>
    %277 = vector.shape_cast %274 : vector<8x128xf32> to vector<1x8x128xf32>
    tpu.vector_store %arg4[%c0_113, %c0_114, %c3456], %277 {strides = array<i32>} : memref<1x8x4096xf32, #tpu.memory_space<vmem>>, vector<1x8x128xf32>,
    %278 = vector.extract_strided_slice %3 {offsets = [0, 1664], sizes = [8, 128], strides = [1, 1]} : vector<8x2048xf32> to vector<8x128xf32>
    %279 = vector.extract_strided_slice %3 {offsets = [0, 1792], sizes = [8, 128], strides = [1, 1]} : vector<8x2048xf32> to vector<8x128xf32>
    %cst_115 = arith.constant 2.500000e-01 : f32
    %280 = vector.broadcast %cst_115 : f32 to vector<8x128xf32>
    %281 = arith.mulf %280, %278 : vector<8x128xf32>
    %cst_116 = arith.constant 7.500000e-01 : f32
    %282 = vector.broadcast %cst_116 : f32 to vector<8x128xf32>
    %283 = arith.mulf %282, %279 : vector<8x128xf32>
    %284 = arith.addf %281, %283 : vector<8x128xf32>
    %c0_117 = arith.constant 0 : index
    %c0_118 = arith.constant 0 : index
    %c3584 = arith.constant 3584 : index
    %285 = vector.load %arg4[%c0_117, %c0_118, %c3584] : memref<1x8x4096xf32, #tpu.memory_space<vmem>>, vector<1x8x128xf32>
    %286 = vector.shape_cast %285 : vector<1x8x128xf32> to vector<8x128xf32>
    %287 = vector.shape_cast %284 : vector<8x128xf32> to vector<1x8x128xf32>
    tpu.vector_store %arg4[%c0_117, %c0_118, %c3584], %287 {strides = array<i32>} : memref<1x8x4096xf32, #tpu.memory_space<vmem>>, vector<1x8x128xf32>,
    %288 = vector.extract_strided_slice %3 {offsets = [0, 1792], sizes = [8, 128], strides = [1, 1]} : vector<8x2048xf32> to vector<8x128xf32>
    %289 = vector.extract_strided_slice %3 {offsets = [0, 1920], sizes = [8, 128], strides = [1, 1]} : vector<8x2048xf32> to vector<8x128xf32>
    %cst_119 = arith.constant 7.500000e-01 : f32
    %290 = vector.broadcast %cst_119 : f32 to vector<8x128xf32>
    %291 = arith.mulf %290, %288 : vector<8x128xf32>
    %cst_120 = arith.constant 2.500000e-01 : f32
    %292 = vector.broadcast %cst_120 : f32 to vector<8x128xf32>
    %293 = arith.mulf %292, %289 : vector<8x128xf32>
    %294 = arith.addf %291, %293 : vector<8x128xf32>
    %c0_121 = arith.constant 0 : index
    %c0_122 = arith.constant 0 : index
    %c3712 = arith.constant 3712 : index
    %295 = vector.load %arg4[%c0_121, %c0_122, %c3712] : memref<1x8x4096xf32, #tpu.memory_space<vmem>>, vector<1x8x128xf32>
    %296 = vector.shape_cast %295 : vector<1x8x128xf32> to vector<8x128xf32>
    %297 = vector.shape_cast %294 : vector<8x128xf32> to vector<1x8x128xf32>
    tpu.vector_store %arg4[%c0_121, %c0_122, %c3712], %297 {strides = array<i32>} : memref<1x8x4096xf32, #tpu.memory_space<vmem>>, vector<1x8x128xf32>,
    %298 = vector.extract_strided_slice %3 {offsets = [0, 1792], sizes = [8, 128], strides = [1, 1]} : vector<8x2048xf32> to vector<8x128xf32>
    %299 = vector.extract_strided_slice %3 {offsets = [0, 1920], sizes = [8, 128], strides = [1, 1]} : vector<8x2048xf32> to vector<8x128xf32>
    %cst_123 = arith.constant 2.500000e-01 : f32
    %300 = vector.broadcast %cst_123 : f32 to vector<8x128xf32>
    %301 = arith.mulf %300, %298 : vector<8x128xf32>
    %cst_124 = arith.constant 7.500000e-01 : f32
    %302 = vector.broadcast %cst_124 : f32 to vector<8x128xf32>
    %303 = arith.mulf %302, %299 : vector<8x128xf32>
    %304 = arith.addf %301, %303 : vector<8x128xf32>
    %c0_125 = arith.constant 0 : index
    %c0_126 = arith.constant 0 : index
    %c3840 = arith.constant 3840 : index
    %305 = vector.load %arg4[%c0_125, %c0_126, %c3840] : memref<1x8x4096xf32, #tpu.memory_space<vmem>>, vector<1x8x128xf32>
    %306 = vector.shape_cast %305 : vector<1x8x128xf32> to vector<8x128xf32>
    %307 = vector.shape_cast %304 : vector<8x128xf32> to vector<1x8x128xf32>
    tpu.vector_store %arg4[%c0_125, %c0_126, %c3840], %307 {strides = array<i32>} : memref<1x8x4096xf32, #tpu.memory_space<vmem>>, vector<1x8x128xf32>,
    %308 = vector.extract_strided_slice %3 {offsets = [0, 1920], sizes = [8, 128], strides = [1, 1]} : vector<8x2048xf32> to vector<8x128xf32>
    %309 = vector.extract_strided_slice %3 {offsets = [0, 1920], sizes = [8, 128], strides = [1, 1]} : vector<8x2048xf32> to vector<8x128xf32>
    %cst_127 = arith.constant 7.500000e-01 : f32
    %310 = vector.broadcast %cst_127 : f32 to vector<8x128xf32>
    %311 = arith.mulf %310, %308 : vector<8x128xf32>
    %cst_128 = arith.constant 2.500000e-01 : f32
    %312 = vector.broadcast %cst_128 : f32 to vector<8x128xf32>
    %313 = arith.mulf %312, %309 : vector<8x128xf32>
    %314 = arith.addf %311, %313 : vector<8x128xf32>
    %c0_129 = arith.constant 0 : index
    %c0_130 = arith.constant 0 : index
    %c3968 = arith.constant 3968 : index
    %315 = vector.load %arg4[%c0_129, %c0_130, %c3968] : memref<1x8x4096xf32, #tpu.memory_space<vmem>>, vector<1x8x128xf32>
    %316 = vector.shape_cast %315 : vector<1x8x128xf32> to vector<8x128xf32>
    %317 = vector.shape_cast %314 : vector<8x128xf32> to vector<1x8x128xf32>
    tpu.vector_store %arg4[%c0_129, %c0_130, %c3968], %317 {strides = array<i32>} : memref<1x8x4096xf32, #tpu.memory_space<vmem>>, vector<1x8x128xf32>,
    return
  }
  func.func @transform_0(%arg0: i32, %arg1: i32) -> (i32, i32) {
    %c0_i32 = arith.constant 0 : i32
    %c0_i32_0 = arith.constant 0 : i32
    return %arg1, %c0_i32 : i32, i32
  }
  func.func @transform_1(%arg0: i32, %arg1: i32) -> (i32, i32, i32) {
    %c0_i32 = arith.constant 0 : i32
    %c0_i32_0 = arith.constant 0 : i32
    %c0_i32_1 = arith.constant 0 : i32
    return %arg0, %c0_i32, %c0_i32_0 : i32, i32, i32
  }
  func.func @transform_2(%arg0: i32, %arg1: i32) -> (i32, i32, i32) {
    %c0_i32 = arith.constant 0 : i32
    %c0_i32_0 = arith.constant 0 : i32
    return %arg0, %arg1, %c0_i32 : i32, i32, i32
  }
}

</mosaic_0001>

<bundles_post_ra>
// kernel: tpu_custom_call.1
= control target key start
LH: loop header
LB: loop body
LE: loop exit
PB: predicated region body
PF: predicated region fallthrough
CT: control target
= control target key end

     0   :  { %7 = vsyncpa [#allocation3], 0  ;;  %s1349_s0 = inlined_call_operand.vmem [shape: f32[32,16], index: 0, kind: input, shape index: {}]   ;;  %s1350_s1 = inlined_call_operand.hbm [shape: f32[2,16,2048], index: 1, kind: input, shape index: {}]   ;;  %s1351_s2 = inlined_call_operand.hbm [shape: f32[2,32,4096], index: 2, kind: output, shape index: {}]  }
   0x1   :  { %9 = vsyncpa [#allocation3 + $0x1], 0 }
   0x2   :  { %10 = vsyncpa [#allocation4], 0 }
   0x3   :  { %12 = vsyncpa [#allocation4 + $0x1], 0  ;;  %s1071_s9 = smov 0   ;;  %s1073_s10 = smov 0  }
   0x4   :  { %s1075_s11 = smov 0   ;;  %s1077_s12 = smov 0  }
   0x5   :  { %s1079_s13 = smov 0   ;;  %s1081_s14 = smov 0  }
   0x6   :  { %s1083_s15 = smov 0   ;;  %s1085_s16 = smov 0  }
   0x7   :  { %s1087_s17 = smov 0   ;;  %s1089_s18 = smov 0  }
   0x8   :  { %s1091_s19 = smov 0  }
   0x9 LB: > { %1355 = sst [smem:[#allocation8_spill]] %s1048_s18  ;;  %s762_s20 = sadd.s32 4294967295, %s1052_s19   ;;  %s1052_s19 = sphi %s1091_s19, %s18_s19   ;;  %s1048_s18 = sphi %s1089_s18, %s1364_s18   ;;  %s1044_s17 = sphi %s1087_s17, %s1372_s17   ;;  %s1040_s16 = sphi %s1085_s16, %s1362_s16   ;;  %s1036_s15 = sphi %s1083_s15, %s1371_s15   ;;  %s1032_s14 = sphi %s1081_s14, %s1370_s14   ;;  %s1028_s13 = sphi %s1079_s13, %s1369_s13   ;;  %s1024_s12 = sphi %s1077_s12, %s1368_s12   ;;  %s1020_s11 = sphi %s1075_s11, %s1367_s11   ;;  %s1016_s10 = sphi %s1073_s10, %s1366_s10   ;;  %s1012_s9 = sphi %s1071_s9, %s1365_s9  }
   0xa   : > { %s763_s21 = sadd.s32 4294967294, %s1052_s19   ;;  %s27_s22 = sadd.s32 1, %s1044_s17 }
   0xb   : > { %s30_s23 = sadd.s32 1, %s1048_s18  ;;  %p28_p0 = scmp.ge.s32.totalorder %s27_s22, 4 }
   0xc   : > { %s63_s24 = sadd.s32 1, %s1032_s14  ;;  %p70_p1 = scmp.ne.s32.totalorder %s1032_s14, %s1028_s13 }
   0xd   : > { %p71_p2 = scmp.eq.s32.totalorder %s1052_s19, 0  ;;  %s1374_s22 = smov (%p28_p0, %s27_s22), 0 }
   0xe   : > { %1356 = sst [smem:[#allocation9_spill]] %s1374_s22  ;;  %s1376_s23 = smov (!%p28_p0, %s30_s23), %s1048_s18 }
   0xf   : > { %p1135_p3 = por %p71_p2, %p70_p1  ;;  %p76_p4 = scmp.ne.s32.totalorder %s1028_s13, %s1024_s12 }
  0x10   : > { %p32_p5 = scmp.ge.s32.totalorder %s1376_s23, 2  ;;  %p77_p6 = scmp.eq.s32.totalorder %s762_s20, 0 }
  0x11   : > { %s87_s26 = ssub.s32 %s1044_s17, %s1374_s22  ;;  %s91_s27 = sadd.s32 1, %s1020_s11 }
  0x12   : > { %s1378_s23 = smov (%p32_p5, %s1376_s23), 0  ;;  %p1145_p7 = por %p77_p6, %p76_p4 }
  0x13   : > { %1358 = sst [smem:[#allocation10_spill]] %s1378_s23  ;;  %p101_p8 = scmp.ne.s32.totalorder %s1020_s11, %s1016_s10 }
  0x14   : > { %s60_s29 = ssub.s32 %s1048_s18, %s1378_s23  ;;  %p102_p9 = scmp.eq.s32.totalorder %s762_s20, 7 }
  0x15   : > { %p61_p10 = scmp.eq.s32.totalorder %s60_s29, 0  ;;  %s88_s30 = sor.u32 %s87_s26, %s60_s29 }
  0x16   : > { %p89_p11 = scmp.eq.s32.totalorder %s88_s30, 0  ;;  %p1153_p12 = por %p102_p9, %p101_p8 }
  0x17   : > { %s1158_s4 = scalar_select %p61_p10, %s1032_s14, %s63_s24  }
  0x18   : > { %s1161_s5 = scalar_select %p89_p11, %s1020_s11, %s91_s27  }
  0x19   : > { %p107_p13 = scmp.ne.s32.totalorder %s1016_s10, %s1012_s9  ;;  %p108_p0 = scmp.eq.s32.totalorder %s763_s21, 7 }
  0x1a   : > { %p808_p1 = scmp.lt.s32.totalorder %s1052_s19, 8  ;;  %s135_s7 = sand.u32 1, %s1032_s14  }
  0x1b   : > { %p1166_p2 = por %p108_p0, %p107_p13  ;;  %s766_s8 = sshll.u32 %s135_s7, 8 }
  0x1c   : > { %s795_s12 = sshll.u32 %s1048_s18, 8  ;;  %s139_s24 = scalar_lea.vmem [#allocation2], %s766_s8 }
  0x1d   : > { %s144_s29 = scalar_lea.hbm %s1350_s1, %s795_s12  ;;  %s147_s30 = sshll.u32 %s139_s24, 4  ;;  %s148_s30 = int_to_ptr.vmem [resolvable:$true] %s147_s30 }
  0x1e   : > { %s145_s23 = sshll.u32 %s144_s29, 4  ;;  %p801_p4 = pnand %p808_p1, %p1135_p3  ;;  %s146_s23 = int_to_ptr.hbm [resolvable:$true] %s145_s23 }
  0x1f   : > { %p769_p5 = scmp.ge.s32.totalorder %s1052_s19, 1  ;;  %s136_s21 = scalar_lea.sflag [#allocation3], %s135_s7 }
  0x20   : > { %s1054_s27 = smov 2048   ;;  %s1055_s22 = smov 128  }
  0x21   : > { %803 = dma.hbm_to_vmem [thread:$0]  (!%p801_p4), %s146_s23, 4096, %s148_s30, %s136_s21, %s1054_s27, %s1054_s27, %s1055_s22  }
  0x22   : > { %p155_p6 = scmp.lt.s32.totalorder %s1052_s19, 9 }
  0x24   : > { %p156_p8 = pnand %p769_p5, %p155_p6 }
  0x25   : > { %s161_s18 = sand.u32 (!%p156_p8), 1, %s1028_s13  }
  0x26   : > { %159 = sbr.rel (%p156_p8) target bundleno = 218 (0xda), region = 28  ;;  %s770_s20 = sshll.u32 (!%p156_p8), %s161_s18, 8 }
  0x27   : > { %s162_s12 = scalar_lea.sflag (!%p156_p8), [#allocation3], %s161_s18  ;;  %s1180_s8 = scalar_lea.vmem (!%p156_p8), [#allocation2], %s770_s20 }
  0x2b   : > { %1003 = dma.done.wait (%p1145_p7), %s162_s12, 4096  }
  0x2c   : > { %1005 = vsyncadd (%p1145_p7), %s162_s12, 4294963200  ;;  %p191_p3 = scmp.lt.s32.totalorder %s1036_s15, 3  ;;  %v211_v0 = vld [vmem:[%s1180_s8 + $0x80] sm:$0xff]  ;;  %v213_v1 = vld [vmem:[%s1180_s8 + $0x90] sm:$0xff]  ;;  %vm228_vm0 = vcmask 130048   ;;  %s188_s28 = sand.u32 1, %s1016_s10  }
  0x2d   : > { %v214_v2 = vld [vmem:[%s1180_s8 + $0x98] sm:$0xff]  ;;  %246 = vmatpush.msra.mxu0 %v211_v0  ;;  %286 = vmatpush.msra.mxu2 %v213_v1  ;;  %v195_v3 = vld [vmem:[%s1180_s8] sm:$0xff]  ;;  %v197_v4 = vld [vmem:[%s1180_s8 + $0x10] sm:$0xff]  ;;  %s771_s26 = sshll.u32 %s188_s28, 8  ;;  %s790_s24 = sshll.u32 %s1036_s15, 5 }
  0x2e   : > { %s192_s22 = scalar_select %p191_p3, %s1036_s15, 3  ;;  %v198_v5 = vld [vmem:[%s1180_s8 + $0x18] sm:$0xff]  ;;  %306 = vmatpush.msra.mxu3 %v214_v2  ;;  %v217_v7 = vld [vmem:[%s1180_s8 + $0xb0] sm:$0xff]  ;;  %v212_v9 = vld [vmem:[%s1180_s8 + $0x88] sm:$0xff] }
  0x2f   : > { %247 = vmatpush.msra.mxu0 %v195_v3  ;;  %287 = vmatpush.msra.mxu2 %v197_v4  ;;  %v218_v8 = vld [vmem:[%s1180_s8 + $0xb8] sm:$0xff]  ;;  %v215_v10 = vld [vmem:[%s1180_s8 + $0xa0] sm:$0xff]  ;;  %v201_v11 = vld [vmem:[%s1180_s8 + $0x30] sm:$0xff]  ;;  %s1260_s29 = scalar_lea.vmem [#allocation5], %s771_s26  ;;  %s791_s30 = sshll.u32 %s1040_s16, 7 }
  0x30   : > { %s772_s23 = sshll.u32 %s192_s22, 3  ;;  %307 = vmatpush.msra.mxu3 %v198_v5  ;;  %v202_v12 = vld [vmem:[%s1180_s8 + $0x38] sm:$0xff]  ;;  %v196_v13 = vld [vmem:[%s1180_s8 + $0x8] sm:$0xff]  ;;  %v199_v14 = vld [vmem:[%s1180_s8 + $0x20] sm:$0xff]  ;;  %266 = vmatpush.msra.mxu1 %v212_v9  ;;  %s659_s15 = sadd.s32 %s791_s30, %s790_s24 }
  0x31   : > { %s194_s7 = scalar_lea.vmem %s1349_s0, %s772_s23  ;;  %366 = vmatpush.msrb.mxu2 %v217_v7  ;;  %326 = vmatpush.msrb.mxu0 %v215_v10  ;;  %v221_v15 = vld [vmem:[%s1180_s8 + $0xd0] sm:$0xff]  ;;  %v216_v16 = vld [vmem:[%s1180_s8 + $0xa8] sm:$0xff]  ;;  %v222_v17 = vld [vmem:[%s1180_s8 + $0xd8] sm:$0xff]  ;;  %s792_s16 = sshll.u32 %s659_s15, 3 }
  0x32   : > { %v1197_v6 = vld [vmem:[%s194_s7] sm:$0xff]  ;;  %386 = vmatpush.msrb.mxu3 %v218_v8  ;;  %267 = vmatpush.msra.mxu1 %v196_v13  ;;  %v205_v18 = vld [vmem:[%s1180_s8 + $0x50] sm:$0xff]  ;;  %v200_v19 = vld [vmem:[%s1180_s8 + $0x28] sm:$0xff]  ;;  %s661_s20 = scalar_lea.hbm %s1351_s2, %s792_s16  ;;  %s663_s12 = sshll.u32 %s1260_s29, 4  ;;  %s664_s12 = int_to_ptr.vmem [resolvable:$true] %s663_s12 }
  0x33   : > { %773 = vmatmul.msk.f32.vlgmr.msra.gmra.mxu0 %vm228_vm0, %v1197_v6  ;;  %775 = vmatmul.msk.f32.vlgmr.msra.gmra.mxu2 %vm228_vm0, %v1197_v6  ;;  %v206_v20 = vld [vmem:[%s1180_s8 + $0x58] sm:$0xff]  ;;  %v219_v21 = vld [vmem:[%s1180_s8 + $0xc0] sm:$0xff]  ;;  %v220_v22 = vld [vmem:[%s1180_s8 + $0xc8] sm:$0xff]  ;;  %s648_s22 = scalar_lea.sflag [#allocation4], %s188_s28  ;;  %s950_s26 = scalar_lea.hbm %s1351_s2, 2048 }
  0x34   : > { %776 = vmatmul.msk.f32.vlgmr.msra.gmra.mxu3 %vm228_vm0, %v1197_v6  ;;  %367 = vmatpush.msrb.mxu2 %v201_v11  ;;  %v225_v23 = vld [vmem:[%s1180_s8 + $0xf0] sm:$0xff]  ;;  %v226_v24 = vld [vmem:[%s1180_s8 + $0xf8] sm:$0xff]  ;;  %v203_v25 = vld [vmem:[%s1180_s8 + $0x40] sm:$0xff] }
  0x35   : > { %387 = vmatpush.msrb.mxu3 %v202_v12  ;;  %327 = vmatpush.msrb.mxu0 %v199_v14  ;;  %v204_v26 = vld [vmem:[%s1180_s8 + $0x48] sm:$0xff]  ;;  %v209_v27 = vld [vmem:[%s1180_s8 + $0x70] sm:$0xff]  ;;  %v210_v28 = vld [vmem:[%s1180_s8 + $0x78] sm:$0xff] }
  0x36   : > { %774 = vmatmul.msk.f32.vlgmr.msra.gmra.mxu1 %vm228_vm0, %v1197_v6  ;;  %446 = vmatpush.msra.mxu2 %v221_v15  ;;  %v223_v29 = vld [vmem:[%s1180_s8 + $0xe0] sm:$0xff]  ;;  %v224_v30 = vld [vmem:[%s1180_s8 + $0xe8] sm:$0xff] }
  0x37   : > { %346 = vmatpush.msrb.mxu1 %v216_v16  ;;  %466 = vmatpush.msra.mxu3 %v222_v17  ;;  %v207_v31 = vld [vmem:[%s1180_s8 + $0x60] sm:$0xff]  ;;  %v208_v32 = vld [vmem:[%s1180_s8 + $0x68] sm:$0xff]  ;;  %s665_s8 = sshll.u32 %s661_s20, 4  ;;  %s666_s8 = int_to_ptr.hbm [resolvable:$true] %s665_s8 }
  0x38   : > { %447 = vmatpush.msra.mxu2 %v205_v18  ;;  %406 = vmatpush.msra.mxu0 %v219_v21  ;;  %s944_s23 = sshra.s32 %s666_s8, 4  ;;  %s945_s23 = int_to_ptr.hbm [resolvable:$true] %s944_s23 }
  0x39   : > { %347 = vmatpush.msrb.mxu1 %v200_v19  ;;  %467 = vmatpush.msra.mxu3 %v206_v20  ;;  %s946_s18 = scalar_lea.hbm %s945_s23, 256  ;;  %p951_p11 = scmp.lt.s32.totalorder %s945_s23, %s1351_s2 }
  0x3a   : > { %407 = vmatpush.msra.mxu0 %v203_v25  ;;  %p947_p7 = scmp.ne.s32.totalorder %s945_s23, %s946_s18  ;;  %p952_p13 = scmp.lt.s32.totalorder %s950_s26, %s946_s18 }
  0x3b   : > { %777 = vmatmul.msk.f32.vlgmr.msrb.gmra.mxu0 %vm228_vm0, %v1197_v6  ;;  %779 = vmatmul.msk.f32.vlgmr.msrb.gmra.mxu2 %vm228_vm0, %v1197_v6 }
  0x3c   : > { %780 = vmatmul.msk.f32.vlgmr.msrb.gmra.mxu3 %vm228_vm0, %v1197_v6  ;;  %426 = vmatpush.msra.mxu1 %v220_v22  ;;  %p948_p9 = pnand %p947_p7, %p1153_p12  ;;  %p953_p0 = por %p952_p13, %p951_p11 }
  0x3d   : > { %526 = vmatpush.msrb.mxu2 %v225_v23  ;;  %546 = vmatpush.msrb.mxu3 %v226_v24 }
  0x3e   : > { %427 = vmatpush.msra.mxu1 %v204_v26  ;;  %486 = vmatpush.msrb.mxu0 %v223_v29  ;;  %p949_p10 = pneg %p948_p9 }
  0x3f   : > { %778 = vmatmul.msk.f32.vlgmr.msrb.gmra.mxu1 %vm228_vm0, %v1197_v6  ;;  %527 = vmatpush.msrb.mxu2 %v209_v27 }
  0x40   : > { %547 = vmatpush.msrb.mxu3 %v210_v28  ;;  %506 = vmatpush.msrb.mxu1 %v224_v30  ;;  %p954_p1 = pnand %p953_p0, %p949_p10 }
  0x41   : > { %487 = vmatpush.msrb.mxu0 %v207_v31 }
  0x42   : > { %507 = vmatpush.msrb.mxu1 %v208_v32 }
  0x43   : > { %781 = vmatmul.msk.f32.vlgmr.msra.gmra.mxu0 %vm228_vm0, %v1197_v6  ;;  %783 = vmatmul.msk.f32.vlgmr.msra.gmra.mxu2 %vm228_vm0, %v1197_v6 }
  0x44   : > { %784 = vmatmul.msk.f32.vlgmr.msra.gmra.mxu3 %vm228_vm0, %v1197_v6 }
  0x47   : > { %782 = vmatmul.msk.f32.vlgmr.msra.gmra.mxu1 %vm228_vm0, %v1197_v6 }
  0x4b   : > { %785 = vmatmul.msk.f32.vlgmr.msrb.gmra.mxu0 %vm228_vm0, %v1197_v6  ;;  %787 = vmatmul.msk.f32.vlgmr.msrb.gmra.mxu2 %vm228_vm0, %v1197_v6 }
  0x4c   : > { %788 = vmatmul.msk.f32.vlgmr.msrb.gmra.mxu3 %vm228_vm0, %v1197_v6 }
  0x4f   : > { %786 = vmatmul.msk.f32.vlgmr.msrb.gmra.mxu1 %vm228_vm0, %v1197_v6 }
  0xb0   : > { %v249_v33 = vpop.f32.mrf.mxu0 }
  0xb1   : > { %552 = vst [vmem:[%s1260_s29] sm:$0xff] %v249_v33  ;;  %v553_v34 = vmul.f32 0.75, %v249_v33  ;;  %v557_v35 = vmul.f32 0.25, %v249_v33 }
  0xb3   : > { %v269_v36 = vpop.f32.mrf.mxu1 }
  0xb4   : > { %v554_v37 = vmul.f32 0.25, %v269_v36  ;;  %v558_v38 = vmul.f32 0.75, %v269_v36 }
  0xb6   : > { %v289_v39 = vpop.f32.mrf.mxu2  ;;  %v555_v46 = vadd.f32 %v554_v37, %v553_v34  ;;  %v559_v47 = vadd.f32 %v558_v38, %v557_v35 }
  0xb7   : > { %v309_v40 = vpop.f32.mrf.mxu3  ;;  %v561_v41 = vmul.f32 0.25, %v289_v39  ;;  %v564_v42 = vmul.f32 0.75, %v289_v39 }
  0xb8   : > { %v567_v43 = vmul.f32 0.25, %v309_v40  ;;  %v570_v44 = vmul.f32 0.75, %v309_v40  ;;  %v329_v45 = vpop.f32.mrf.mxu0  ;;  %556 = vst [vmem:[%s1260_s29 + $0x8] sm:$0xff] %v555_v46 }
  0xb9   : > { %v573_v48 = vmul.f32 0.25, %v329_v45  ;;  %v562_v49 = vadd.f32 %v561_v41, %v558_v38  ;;  %v565_v50 = vadd.f32 %v564_v42, %v554_v37  ;;  %v576_v51 = vmul.f32 0.75, %v329_v45  ;;  %560 = vst [vmem:[%s1260_s29 + $0x10] sm:$0xff] %v559_v47 }
  0xba   : > { %v568_v52 = vadd.f32 %v567_v43, %v564_v42  ;;  %v571_v53 = vadd.f32 %v570_v44, %v561_v41 }
  0xbb   : > { %563 = vst [vmem:[%s1260_s29 + $0x18] sm:$0xff] %v562_v49  ;;  %v574_v54 = vadd.f32 %v573_v48, %v570_v44  ;;  %v577_v55 = vadd.f32 %v576_v51, %v567_v43 }
  0xbc   : > { %566 = vst [vmem:[%s1260_s29 + $0x20] sm:$0xff] %v565_v50  ;;  %v349_v56 = vpop.f32.mrf.mxu1 }
  0xbd   : > { %569 = vst [vmem:[%s1260_s29 + $0x28] sm:$0xff] %v568_v52  ;;  %v579_v57 = vmul.f32 0.25, %v349_v56  ;;  %v582_v58 = vmul.f32 0.75, %v349_v56 }
  0xbe   : > { %v369_v59 = vpop.f32.mrf.mxu2  ;;  %572 = vst [vmem:[%s1260_s29 + $0x30] sm:$0xff] %v571_v53 }
  0xbf   : > { %v389_v60 = vpop.f32.mrf.mxu3  ;;  %v585_v61 = vmul.f32 0.25, %v369_v59  ;;  %v588_v62 = vmul.f32 0.75, %v369_v59  ;;  %575 = vst [vmem:[%s1260_s29 + $0x38] sm:$0xff] %v574_v54  ;;  %v580_v2 = vadd.f32 %v579_v57, %v576_v51  ;;  %v583_v3 = vadd.f32 %v582_v58, %v573_v48 }
  0xc0   : > { %v591_v63 = vmul.f32 0.25, %v389_v60  ;;  %v594_v0 = vmul.f32 0.75, %v389_v60  ;;  %v409_v1 = vpop.f32.mrf.mxu0  ;;  %578 = vst [vmem:[%s1260_s29 + $0x40] sm:$0xff] %v577_v55 }
  0xc1   : > { %v597_v4 = vmul.f32 0.25, %v409_v1  ;;  %v586_v5 = vadd.f32 %v585_v61, %v582_v58  ;;  %v589_v6 = vadd.f32 %v588_v62, %v579_v57  ;;  %v600_v7 = vmul.f32 0.75, %v409_v1  ;;  %581 = vst [vmem:[%s1260_s29 + $0x48] sm:$0xff] %v580_v2 }
  0xc2   : > { %v592_v8 = vadd.f32 %v591_v63, %v588_v62  ;;  %584 = vst [vmem:[%s1260_s29 + $0x50] sm:$0xff] %v583_v3  ;;  %v595_v9 = vadd.f32 %v594_v0, %v585_v61 }
  0xc3   : > { %587 = vst [vmem:[%s1260_s29 + $0x58] sm:$0xff] %v586_v5  ;;  %v598_v10 = vadd.f32 %v597_v4, %v594_v0  ;;  %v601_v11 = vadd.f32 %v600_v7, %v591_v63 }
  0xc4   : > { %590 = vst [vmem:[%s1260_s29 + $0x60] sm:$0xff] %v589_v6  ;;  %v429_v12 = vpop.f32.mrf.mxu1 }
  0xc5   : > { %593 = vst [vmem:[%s1260_s29 + $0x68] sm:$0xff] %v592_v8  ;;  %v603_v13 = vmul.f32 0.25, %v429_v12  ;;  %v606_v14 = vmul.f32 0.75, %v429_v12 }
  0xc6   : > { %v449_v15 = vpop.f32.mrf.mxu2  ;;  %596 = vst [vmem:[%s1260_s29 + $0x70] sm:$0xff] %v595_v9 }
  0xc7   : > { %v469_v16 = vpop.f32.mrf.mxu3  ;;  %v609_v17 = vmul.f32 0.25, %v449_v15  ;;  %v612_v18 = vmul.f32 0.75, %v449_v15  ;;  %599 = vst [vmem:[%s1260_s29 + $0x78] sm:$0xff] %v598_v10  ;;  %v604_v22 = vadd.f32 %v603_v13, %v600_v7  ;;  %v607_v23 = vadd.f32 %v606_v14, %v597_v4 }
  0xc8   : > { %v615_v19 = vmul.f32 0.25, %v469_v16  ;;  %v618_v20 = vmul.f32 0.75, %v469_v16  ;;  %v489_v21 = vpop.f32.mrf.mxu0  ;;  %602 = vst [vmem:[%s1260_s29 + $0x80] sm:$0xff] %v601_v11 }
  0xc9   : > { %v621_v24 = vmul.f32 0.25, %v489_v21  ;;  %v610_v25 = vadd.f32 %v609_v17, %v606_v14  ;;  %v613_v26 = vadd.f32 %v612_v18, %v603_v13  ;;  %v624_v27 = vmul.f32 0.75, %v489_v21  ;;  %605 = vst [vmem:[%s1260_s29 + $0x88] sm:$0xff] %v604_v22 }
  0xca   : > { %v616_v28 = vadd.f32 %v615_v19, %v612_v18  ;;  %608 = vst [vmem:[%s1260_s29 + $0x90] sm:$0xff] %v607_v23  ;;  %v619_v29 = vadd.f32 %v618_v20, %v609_v17 }
  0xcb   : > { %611 = vst [vmem:[%s1260_s29 + $0x98] sm:$0xff] %v610_v25  ;;  %v622_v30 = vadd.f32 %v621_v24, %v618_v20  ;;  %v625_v31 = vadd.f32 %v624_v27, %v615_v19 }
  0xcc   : > { %614 = vst [vmem:[%s1260_s29 + $0xa0] sm:$0xff] %v613_v26  ;;  %v509_v32 = vpop.f32.mrf.mxu1 }
  0xcd   : > { %617 = vst [vmem:[%s1260_s29 + $0xa8] sm:$0xff] %v616_v28  ;;  %v627_v33 = vmul.f32 0.25, %v509_v32  ;;  %v630_v34 = vmul.f32 0.75, %v509_v32 }
  0xce   : > { %v529_v35 = vpop.f32.mrf.mxu2  ;;  %620 = vst [vmem:[%s1260_s29 + $0xb0] sm:$0xff] %v619_v29 }
  0xcf   : > { %v549_v36 = vpop.f32.mrf.mxu3  ;;  %v633_v37 = vmul.f32 0.25, %v529_v35  ;;  %v636_v38 = vmul.f32 0.75, %v529_v35  ;;  %623 = vst [vmem:[%s1260_s29 + $0xb8] sm:$0xff] %v622_v30  ;;  %v628_v41 = vadd.f32 %v627_v33, %v624_v27  ;;  %v631_v42 = vadd.f32 %v630_v34, %v621_v24 }
  0xd0   : > { %v639_v39 = vmul.f32 0.25, %v549_v36  ;;  %v642_v40 = vmul.f32 0.75, %v549_v36  ;;  %626 = vst [vmem:[%s1260_s29 + $0xc0] sm:$0xff] %v625_v31 }
  0xd1   : > { %v634_v43 = vadd.f32 %v633_v37, %v630_v34  ;;  %v637_v44 = vadd.f32 %v636_v38, %v627_v33  ;;  %629 = vst [vmem:[%s1260_s29 + $0xc8] sm:$0xff] %v628_v41 }
  0xd2   : > { %v640_v45 = vadd.f32 %v639_v39, %v636_v38  ;;  %632 = vst [vmem:[%s1260_s29 + $0xd0] sm:$0xff] %v631_v42  ;;  %v643_v46 = vadd.f32 %v642_v40, %v633_v37  ;;  %v645_v47 = vadd.f32 %v642_v40, %v639_v39 }
  0xd3   : > { %635 = vst [vmem:[%s1260_s29 + $0xd8] sm:$0xff] %v634_v43 }
  0xd4   : > { %638 = vst [vmem:[%s1260_s29 + $0xe0] sm:$0xff] %v637_v44 }
  0xd5   : > { %641 = vst [vmem:[%s1260_s29 + $0xe8] sm:$0xff] %v640_v45 }
  0xd6   : > { %644 = vst [vmem:[%s1260_s29 + $0xf0] sm:$0xff] %v643_v46 }
  0xd7   : > { %646 = vst [vmem:[%s1260_s29 + $0xf8] sm:$0xff] %v645_v47 }
  0xd8   : > { %957 = shalt.err (!%p954_p1)
}
  0xd9   : > { %798 = dma.vmem_to_hbm [thread:$0]  (%p1153_p12), %s664_s12, 4096, %s666_s8, %s648_s22  }
  0xda PF: > { %p809_p4 = scmp.ge.s32.totalorder %s1052_s19, 2  ;;  %s677_s28 = sand.u32 1, %s1012_s9  }
  0xdb   : > { %s678_s29 = scalar_lea.sflag [#allocation4], %s677_s28 }
  0xdc   : > { %p805_p5 = pnand %p809_p4, %p1166_p2 }
  0xde   : > { %p806_p6 = pneg %p805_p5 }
  0xe0   : > { %1007 = dma.done.wait (%p806_p6), %s678_s29, 4096  }
  0xe1   : > { %1009 = vsyncadd (%p806_p6), %s678_s29, 4294963200  ;;  %s18_s19 = sadd.s32 1, %s1052_s19   ;;  %s1362_s16 = sld [smem:[#allocation8_spill]] }
  0xe2   : > { %p15_p8 = scmp.ge.s32.totalorder %s18_s19, 10   ;;  %s1363_s3 = sld [smem:[#allocation9_spill]] }
  0xe3   : > { %s1364_s18 = sld [smem:[#allocation10_spill]]  ;;  %s1365_s9 = smov %s1016_s10 }
  0xe4   : > { %s1366_s10 = smov %s1020_s11  ;;  %s1367_s11 = smov %s1161_s5 }
  0xe5   : > { %s1368_s12 = smov %s1028_s13  ;;  %s1369_s13 = smov %s1032_s14 }
  0xe6   : > { %s1370_s14 = smov %s1158_s4  ;;  %s1371_s15 = smov %s1044_s17 }
  0xe7   :  { %17 = sbr.rel (!%p15_p8) target bundleno = 9 (0x9), region = 76 }
  0xe8   : > { %s1372_s17 = smov %s1363_s3 }
  0xec   :  { %684 = vsyncpa [#allocation3], 1 }
  0xed   :  { %686 = vsyncpa [#allocation3 + $0x1], 1 }
  0xee   :  { %687 = vsyncpa [#allocation4], 1 }
  0xef   :  { %689 = vsyncpa [#allocation4 + $0x1], 1 }

</bundles_post_ra>
